<compile_context>
chip_gen: v7x
topology: tpu7x:2x2x1
jax: 0.10.0
libtpu: 0.0.40
codegen_flags: <defaults>
</compile_context>

<pallas_src>
import functools
import math

import jax
import jax.numpy as jnp
from jax.experimental import pallas as pl
from jax.experimental.pallas import tpu as pltpu


# ---------------------------------------------------------------------------
# TPU generation detection (tile / VMEM sizing + dual-TC semantics on v7x).
# ---------------------------------------------------------------------------
def _tpu_generation():
    try:
        kind = jax.devices()[0].device_kind.lower()
    except Exception:
        return "unknown"
    if "v7" in kind:
        return "v7x"
    if "v6" in kind:
        return "v6e"
    if "v5" in kind:
        return "v5e"
    return "unknown"


def _physical_vmem_bytes(gen):
    try:
        return int(pltpu.get_tpu_info().vmem_capacity_bytes)
    except Exception:
        return {"v5e": 128 << 20, "v6e": 128 << 20, "v7x": 64 << 20}.get(gen, 64 << 20)


# ---------------------------------------------------------------------------
# Kernel
# ---------------------------------------------------------------------------
def _softmax_kernel(x_ref, o_ref, *, low_precision):
    x = x_ref[...]
    if not low_precision:
        x = x.astype(jnp.float32)
    # x.max(-1, keepdim=True)[0].detach() -> stop-gradient is a fwd no-op.
    x_max = jnp.max(x, axis=-1, keepdims=True)
    xme = jnp.exp(x - x_max)
    # Row sum accumulated in f32 even on the bf16 path.
    denom = jnp.sum(xme, axis=-1, keepdims=True, dtype=jnp.float32)
    # denom >= 1 (the max entry contributes exp(0)=1) -> approx reciprocal is
    # safe; one Newton-Raphson step on the narrow column restores ~f32 acc.
    inv = pl.reciprocal(denom, approx=True)
    inv = inv * (2.0 - denom * inv)
    o_ref[...] = (xme * inv.astype(xme.dtype)).astype(o_ref.dtype)


# ---------------------------------------------------------------------------
# Tiling / wrapper
# ---------------------------------------------------------------------------
def _choose_row_tile(m, d, gen):
    """Row tile: generation-aware f32-equivalent byte budget, multiple of 8."""
    target_bytes = (4 << 20) if gen == "v7x" else (8 << 20)
    rows = max(8, target_bytes // (4 * d))
    rows = min(rows, -(-m // 8) * 8)             # no taller than the problem
    return max(8, (rows // 8) * 8)


def softmax_attention(x, *, row_tile=None):
    """Softmax over the last axis of x (any leading shape)."""
    orig_shape = x.shape
    d = int(orig_shape[-1])
    m = int(math.prod(orig_shape[:-1])) if len(orig_shape) > 1 else 1
    x2 = x.reshape(m, d)

    gen = _tpu_generation()
    itemsize = jnp.dtype(x.dtype).itemsize
    # bf16 wide intermediates only where the VPU/EUP handle bf16 natively.
    low_precision = (x.dtype == jnp.bfloat16) and gen in ("v6e", "v7x")

    if row_tile is None:
        row_tile = _choose_row_tile(m, d, gen)
    row_tile = max(8, (int(row_tile) // 8) * 8)

    # Generation-aware scoped-VMEM cap (leave headroom below physical).
    phys = _physical_vmem_bytes(gen)
    cap = (48 << 20) if gen == "v7x" else (100 << 20)
    cap = min(cap, max(32 << 20, phys - (8 << 20)))

    def _vmem_est(rows):
        blk_io = rows * d * itemsize
        wide_tmp = 2 * blk_io if low_precision else 3 * rows * d * 4
        return 4 * blk_io + wide_tmp + (2 << 20)   # 2x in + 2x out dbl-buf

    while _vmem_est(row_tile) > cap and row_tile > 8:
        row_tile = max(8, ((row_tile // 2) // 8) * 8)

    grid = (pl.cdiv(m, row_tile),)
    vmem_limit = int(min(cap, max(32 << 20, 2 * _vmem_est(row_tile))))

    # On v7x, split the row-tile axis across the 2 TensorCores; on v5e/v6e
    # (1 TC) plain "parallel" is sufficient (and core_parallel may not apply).
    if gen == "v7x":
        dim_sem = (pltpu.CORE_PARALLEL,)
    else:
        dim_sem = ("parallel",)

    cost = pl.CostEstimate(
        flops=5 * m * d,
        transcendentals=m * d,
        bytes_accessed=2 * m * d * itemsize,
    )

    kernel = functools.partial(_softmax_kernel, low_precision=low_precision)

    out = pl.pallas_call(
        kernel,
        out_shape=jax.ShapeDtypeStruct((m, d), x.dtype),
        grid_spec=pltpu.PrefetchScalarGridSpec(
            num_scalar_prefetch=0,
            grid=grid,
            in_specs=[pl.BlockSpec((row_tile, d), lambda i: (i, 0))],
            out_specs=pl.BlockSpec((row_tile, d), lambda i: (i, 0)),
        ),
        compiler_params=pltpu.CompilerParams(
            dimension_semantics=dim_sem,
            vmem_limit_bytes=vmem_limit,
        ),
        cost_estimate=cost,
    )(x2)

    return out.reshape(orig_shape)


# ---------------------------------------------------------------------------
# Reference + tests
# ---------------------------------------------------------------------------
def _ref_softmax(a):
    a_max = jnp.max(a, axis=-1, keepdims=True)
    e = jnp.exp(a - a_max)
    return e / jnp.sum(e, axis=-1, keepdims=True)


if __name__ == "__main__":
    key = jax.random.PRNGKey(0)
    k1, k2, k3, k4 = jax.random.split(key, 4)

    # SoftmaxAttention has no parameters; typical use is attention scores of
    # shape (batch, heads, seq, seq).
    x = jax.random.normal(k1, (2, 4, 16, 16), dtype=jnp.float32)
    out = jax.block_until_ready(softmax_attention(x))
    ref = _ref_softmax(x)
    assert out.shape == x.shape
    assert jnp.allclose(out, ref, atol=1e-5, rtol=1e-5)
    assert jnp.allclose(jnp.sum(out, axis=-1), 1.0, atol=1e-5)

    # Ragged last row-block (M % row_tile != 0) with a forced small tile:
    # exercises the no-padding path; no NaN/Inf leakage from padded rows.
    x2 = jax.random.normal(k2, (3, 5, 7, 33), dtype=jnp.float32)
    out2 = jax.block_until_ready(softmax_attention(x2, row_tile=16))
    assert out2.shape == x2.shape
    assert bool(jnp.all(jnp.isfinite(out2)))
    assert jnp.allclose(out2, _ref_softmax(x2), atol=1e-5, rtol=1e-5)

    # Lane-dense (D >= 128) case with a ragged last block at larger M.
    x3 = jax.random.normal(k3, (2, 4, 128, 128), dtype=jnp.float32)
    out3 = jax.block_until_ready(softmax_attention(x3, row_tile=384))
    assert out3.shape == x3.shape
    assert bool(jnp.all(jnp.isfinite(out3)))
    assert jnp.allclose(out3, _ref_softmax(x3), atol=1e-5, rtol=1e-5)

    # bf16 input: uses the reduced-precision wide-intermediate path on
    # v6e/v7x, f32 upcast on v5e; compare against an f32 reference.
    x4_f32 = jax.random.normal(k4, (2, 2, 32, 128), dtype=jnp.float32)
    x4 = x4_f32.astype(jnp.bfloat16)
    out4 = jax.block_until_ready(softmax_attention(x4))
    ref4 = _ref_softmax(x4.astype(jnp.float32))
    assert out4.dtype == jnp.bfloat16
    assert jnp.allclose(out4.astype(jnp.float32), ref4, atol=2e-2, rtol=0)

    print("KERNEL_OK")
</pallas_src>

<mosaic_0001>
module attributes {stable_mosaic.version = 11 : i64} {
  func.func @_softmax_kernel(%arg0: i32, %arg1: memref<128x16xf32, #tpu.memory_space<vmem>>, %arg2: memref<128x16xf32, #tpu.memory_space<vmem>>) attributes {dimension_semantics = [#tpu.dimension_semantics<parallel>], iteration_bounds = array<i64: 1>, scalar_prefetch = 0 : i64, scratch_operands = 0 : i64, tpu.core_type = #tpu.core_type<tc>, window_params = [{transform_indices = @transform_0, window_bounds = array<i64: 128, 16>}, {transform_indices = @transform_1, window_bounds = array<i64: 128, 16>}]} {
    %c0 = arith.constant 0 : index
    %c0_0 = arith.constant 0 : index
    %0 = vector.load %arg1[%c0, %c0_0] : memref<128x16xf32, #tpu.memory_space<vmem>>, vector<128x16xf32>
    %cst = arith.constant dense<0xFF800000> : vector<128xf32>
    %1 = vector.multi_reduction <maximumf>, %0, %cst [1] : vector<128x16xf32> to vector<128xf32>
    %2 = vector.shape_cast %1 : vector<128xf32> to vector<128x1xf32>
    %3 = vector.broadcast %2 : vector<128x1xf32> to vector<128x16xf32>
    %4 = arith.subf %0, %3 : vector<128x16xf32>
    %5 = math.exp %4 : vector<128x16xf32>
    %cst_1 = arith.constant dense<0.000000e+00> : vector<128xf32>
    %6 = vector.multi_reduction <add>, %5, %cst_1 [1] : vector<128x16xf32> to vector<128xf32>
    %7 = vector.shape_cast %6 : vector<128xf32> to vector<128x1xf32>
    %8 = tpu.reciprocal %7 {approx = true} : vector<128x1xf32> -> vector<128x1xf32>
    %9 = arith.mulf %7, %8 : vector<128x1xf32>
    %cst_2 = arith.constant 2.000000e+00 : f32
    %10 = vector.broadcast %cst_2 : f32 to vector<128x1xf32>
    %11 = arith.subf %10, %9 : vector<128x1xf32>
    %12 = arith.mulf %8, %11 : vector<128x1xf32>
    %13 = vector.broadcast %12 : vector<128x1xf32> to vector<128x16xf32>
    %14 = arith.mulf %5, %13 : vector<128x16xf32>
    %c0_3 = arith.constant 0 : index
    %c0_4 = arith.constant 0 : index
    %15 = vector.load %arg2[%c0_3, %c0_4] : memref<128x16xf32, #tpu.memory_space<vmem>>, vector<128x16xf32>
    tpu.vector_store %arg2[%c0_3, %c0_4], %14 {strides = array<i32>} : memref<128x16xf32, #tpu.memory_space<vmem>>, vector<128x16xf32>,
    return
  }
  func.func @transform_0(%arg0: i32) -> (i32, i32) {
    %c0_i32 = arith.constant 0 : i32
    %c0_i32_0 = arith.constant 0 : i32
    return %arg0, %c0_i32 : i32, i32
  }
  func.func @transform_1(%arg0: i32) -> (i32, i32) {
    %c0_i32 = arith.constant 0 : i32
    %c0_i32_0 = arith.constant 0 : i32
    return %arg0, %c0_i32 : i32, i32
  }
}

</mosaic_0001>

<bundles_post_ra>
// kernel: tpu_custom_call.1
= control target key start
LH: loop header
LB: loop body
LE: loop exit
PB: predicated region body
PF: predicated region fallthrough
CT: control target
= control target key end

     0   :  { %vm24_vm0 = vcmask 130048   ;;  %s583_s0 = inlined_call_operand.vmem [shape: f32[128,16], index: 0, kind: input, shape index: {}]   ;;  %s584_s1 = inlined_call_operand.vmem [shape: f32[128,16], index: 1, kind: output, shape index: {}]  }
   0x1   :  { %v8_v0 = vld [vmem:[%s583_s0] sm:$0xff]  ;;  %v10_v1 = vld [vmem:[%s583_s0 + $0x10] sm:$0xff]  ;;  %v9_v2 = vld [vmem:[%s583_s0 + $0x8] sm:$0xff] }
   0x2   :  { %v25_v3 = vsel %vm24_vm0, %v8_v0, -inf  ;;  %v31_v4 = vsel %vm24_vm0, %v10_v1, -inf  ;;  %v11_v5 = vld [vmem:[%s583_s0 + $0x18] sm:$0xff]  ;;  %v28_v6 = vsel %vm24_vm0, %v9_v2, -inf  ;;  %v12_v8 = vld [vmem:[%s583_s0 + $0x20] sm:$0xff]  ;;  %v13_v9 = vld [vmem:[%s583_s0 + $0x28] sm:$0xff] }
   0x3   :  { %26 = vmax.xlane.f32.xlu0 %v25_v3  ;;  %32 = vmax.xlane.f32.xlu1 %v31_v4  ;;  %v34_v7 = vsel %vm24_vm0, %v11_v5, -inf  ;;  %v37_v10 = vsel %vm24_vm0, %v12_v8, -inf  ;;  %v40_v11 = vsel %vm24_vm0, %v13_v9, -inf  ;;  %v14_v12 = vld [vmem:[%s583_s0 + $0x30] sm:$0xff]  ;;  %v15_v13 = vld [vmem:[%s583_s0 + $0x38] sm:$0xff]  ;;  %v378_v16 = vld [vmem:[%s583_s0 + $0x40] sm:$0xff] }
   0x4   :  { %v43_v14 = vsel %vm24_vm0, %v14_v12, -inf  ;;  %v46_v15 = vsel %vm24_vm0, %v15_v13, -inf  ;;  %v383_v17 = vld [vmem:[%s583_s0 + $0x48] sm:$0xff]  ;;  %v49_v18 = vsel %vm24_vm0, %v378_v16, -inf  ;;  %v392_v20 = vld [vmem:[%s583_s0 + $0x50] sm:$0xff]  ;;  %v397_v21 = vld [vmem:[%s583_s0 + $0x58] sm:$0xff] }
   0x5   :  { %v52_v19 = vsel %vm24_vm0, %v383_v17, -inf  ;;  %v55_v22 = vsel %vm24_vm0, %v392_v20, -inf  ;;  %v58_v23 = vsel %vm24_vm0, %v397_v21, -inf  ;;  %v406_v24 = vld [vmem:[%s583_s0 + $0x60] sm:$0xff]  ;;  %v411_v25 = vld [vmem:[%s583_s0 + $0x68] sm:$0xff]  ;;  %v420_v28 = vld [vmem:[%s583_s0 + $0x70] sm:$0xff] }
   0x6   :  { %v61_v26 = vsel %vm24_vm0, %v406_v24, -inf  ;;  %v64_v27 = vsel %vm24_vm0, %v411_v25, -inf  ;;  %v425_v29 = vld [vmem:[%s583_s0 + $0x78] sm:$0xff]  ;;  %v67_v30 = vsel %vm24_vm0, %v420_v28, -inf }
   0x7   :  { %29 = vmax.xlane.f32.xlu0 %v28_v6  ;;  %35 = vmax.xlane.f32.xlu1 %v34_v7  ;;  %v70_v31 = vsel %vm24_vm0, %v425_v29, -inf }
   0xb   :  { %38 = vmax.xlane.f32.xlu0 %v37_v10  ;;  %41 = vmax.xlane.f32.xlu1 %v40_v11 }
   0xf   :  { %44 = vmax.xlane.f32.xlu0 %v43_v14  ;;  %47 = vmax.xlane.f32.xlu1 %v46_v15 }
  0x13   :  { %50 = vmax.xlane.f32.xlu0 %v49_v18  ;;  %53 = vmax.xlane.f32.xlu1 %v52_v19 }
  0x17   :  { %56 = vmax.xlane.f32.xlu0 %v55_v22  ;;  %59 = vmax.xlane.f32.xlu1 %v58_v23 }
  0x1b   :  { %62 = vmax.xlane.f32.xlu0 %v61_v26  ;;  %65 = vmax.xlane.f32.xlu1 %v64_v27 }
  0x1f   :  { %68 = vmax.xlane.f32.xlu0 %v67_v30  ;;  %71 = vmax.xlane.f32.xlu1 %v70_v31 }
  0x90   :  { %v27_v32 = vpop.xlane.xlu0 %26  ;;  %v33_v33 = vpop.xlane.xlu1 %32 }
  0x91   :  { %v73_v34 = vsub.f32 %v8_v0, %v27_v32  ;;  %v75_v35 = vsub.f32 %v10_v1, %v33_v33 }
  0x93   :  { %v89_v36 = vmul.f32 1.442695, %v73_v34  ;;  %v93_v37 = vmul.f32 1.442695, %v75_v35 }
  0x94   :  { %v30_v38 = vpop.xlane.xlu0 %29  ;;  %v36_v39 = vpop.xlane.xlu1 %35 }
  0x95   :  { %269 = vpow2.f32 %v89_v36  ;;  %v74_v40 = vsub.f32 %v9_v2, %v30_v38  ;;  %v76_v41 = vsub.f32 %v11_v5, %v36_v39 }
  0x96   :  { %271 = vpow2.f32 %v93_v37 }
  0x97   :  { %v91_v42 = vmul.f32 1.442695, %v74_v40  ;;  %v95_v43 = vmul.f32 1.442695, %v76_v41 }
  0x98   :  { %v39_v44 = vpop.xlane.xlu0 %38  ;;  %v42_v45 = vpop.xlane.xlu1 %41 }
  0x99   :  { %273 = vpow2.f32 %v91_v42  ;;  %v77_v46 = vsub.f32 %v12_v8, %v39_v44  ;;  %v78_v47 = vsub.f32 %v13_v9, %v42_v45 }
  0x9a   :  { %275 = vpow2.f32 %v95_v43 }
  0x9b   :  { %v97_v48 = vmul.f32 1.442695, %v77_v46  ;;  %v99_v49 = vmul.f32 1.442695, %v78_v47 }
  0x9c   :  { %v45_v50 = vpop.xlane.xlu0 %44  ;;  %v48_v51 = vpop.xlane.xlu1 %47 }
  0x9d   :  { %277 = vpow2.f32 %v97_v48  ;;  %v79_v52 = vsub.f32 %v14_v12, %v45_v50  ;;  %v80_v53 = vsub.f32 %v15_v13, %v48_v51 }
  0x9e   :  { %279 = vpow2.f32 %v99_v49 }
  0x9f   :  { %v431_v54 = vpop.eup %269  ;;  %v101_v55 = vmul.f32 1.442695, %v79_v52  ;;  %v103_v56 = vmul.f32 1.442695, %v80_v53 }
  0xa0   :  { %v433_v57 = vpop.eup %271  ;;  %v51_v58 = vpop.xlane.xlu0 %50  ;;  %v121_v59 = vsel %vm24_vm0, %v431_v54, 0.0 }
  0xa1   :  { %v54_v60 = vpop.xlane.xlu1 %53  ;;  %281 = vpow2.f32 %v101_v55  ;;  %v81_v61 = vsub.f32 %v378_v16, %v51_v58  ;;  %122 = vadd.xlane.f32.xlu0 %v121_v59  ;;  %v127_v63 = vsel %vm24_vm0, %v433_v57, 0.0 }
  0xa2   :  { %v82_v62 = vsub.f32 %v383_v17, %v54_v60  ;;  %283 = vpow2.f32 %v103_v56 }
  0xa3   :  { %v441_v0 = vpop.eup %273  ;;  %v105_v1 = vmul.f32 1.442695, %v81_v61 }
  0xa4   :  { %v107_v2 = vmul.f32 1.442695, %v82_v62  ;;  %v443_v3 = vpop.eup %275  ;;  %v57_v4 = vpop.xlane.xlu0 %56  ;;  %v124_v5 = vsel %vm24_vm0, %v441_v0, 0.0 }
  0xa5   :  { %v60_v6 = vpop.xlane.xlu1 %59  ;;  %285 = vpow2.f32 %v105_v1  ;;  %v83_v7 = vsub.f32 %v392_v20, %v57_v4  ;;  %128 = vadd.xlane.f32.xlu0 %v127_v63  ;;  %125 = vadd.xlane.f32.xlu1 %v124_v5  ;;  %v130_v9 = vsel %vm24_vm0, %v443_v3, 0.0 }
  0xa6   :  { %v84_v8 = vsub.f32 %v397_v21, %v60_v6  ;;  %287 = vpow2.f32 %v107_v2 }
  0xa7   :  { %v451_v10 = vpop.eup %277  ;;  %v109_v11 = vmul.f32 1.442695, %v83_v7 }
  0xa8   :  { %v111_v12 = vmul.f32 1.442695, %v84_v8  ;;  %v453_v13 = vpop.eup %279  ;;  %v63_v14 = vpop.xlane.xlu0 %62  ;;  %v133_v15 = vsel %vm24_vm0, %v451_v10, 0.0 }
  0xa9   :  { %v66_v16 = vpop.xlane.xlu1 %65  ;;  %289 = vpow2.f32 %v109_v11  ;;  %v85_v17 = vsub.f32 %v406_v24, %v63_v14  ;;  %131 = vadd.xlane.f32.xlu1 %v130_v9  ;;  %134 = vadd.xlane.f32.xlu0 %v133_v15  ;;  %v136_v19 = vsel %vm24_vm0, %v453_v13, 0.0 }
  0xaa   :  { %v86_v18 = vsub.f32 %v411_v25, %v66_v16  ;;  %291 = vpow2.f32 %v111_v12 }
  0xab   :  { %v461_v20 = vpop.eup %281  ;;  %v113_v21 = vmul.f32 1.442695, %v85_v17 }
  0xac   :  { %v115_v22 = vmul.f32 1.442695, %v86_v18  ;;  %v463_v23 = vpop.eup %283  ;;  %v69_v26 = vpop.xlane.xlu0 %68  ;;  %v139_v27 = vsel %vm24_vm0, %v461_v20, 0.0 }
  0xad   :  { %v72_v30 = vpop.xlane.xlu1 %71  ;;  %293 = vpow2.f32 %v113_v21  ;;  %v87_v24 = vsub.f32 %v420_v28, %v69_v26  ;;  %137 = vadd.xlane.f32.xlu1 %v136_v19  ;;  %140 = vadd.xlane.f32.xlu0 %v139_v27  ;;  %v142_v31 = vsel %vm24_vm0, %v463_v23, 0.0 }
  0xae   :  { %v88_v25 = vsub.f32 %v425_v29, %v72_v30  ;;  %295 = vpow2.f32 %v115_v22 }
  0xaf   :  { %v471_v32 = vpop.eup %285  ;;  %v117_v33 = vmul.f32 1.442695, %v87_v24 }
  0xb0   :  { %v119_v34 = vmul.f32 1.442695, %v88_v25  ;;  %v473_v35 = vpop.eup %287  ;;  %v145_v36 = vsel %vm24_vm0, %v471_v32, 0.0 }
  0xb1   :  { %297 = vpow2.f32 %v117_v33  ;;  %143 = vadd.xlane.f32.xlu1 %v142_v31  ;;  %146 = vadd.xlane.f32.xlu0 %v145_v36  ;;  %v148_v28 = vsel %vm24_vm0, %v473_v35, 0.0 }
  0xb2   :  { %299 = vpow2.f32 %v119_v34 }
  0xb3   :  { %v479_v29 = vpop.eup %289 }
  0xb4   :  { %v481_v37 = vpop.eup %291  ;;  %v151_v38 = vsel %vm24_vm0, %v479_v29, 0.0 }
  0xb5   :  { %149 = vadd.xlane.f32.xlu1 %v148_v28  ;;  %152 = vadd.xlane.f32.xlu0 %v151_v38  ;;  %v154_v39 = vsel %vm24_vm0, %v481_v37, 0.0 }
  0xb7   :  { %v487_v40 = vpop.eup %293 }
  0xb8   :  { %v489_v41 = vpop.eup %295  ;;  %v157_v42 = vsel %vm24_vm0, %v487_v40, 0.0 }
  0xb9   :  { %155 = vadd.xlane.f32.xlu1 %v154_v39  ;;  %158 = vadd.xlane.f32.xlu0 %v157_v42  ;;  %v160_v43 = vsel %vm24_vm0, %v489_v41, 0.0 }
  0xbb   :  { %v495_v44 = vpop.eup %297 }
  0xbc   :  { %v497_v45 = vpop.eup %299  ;;  %v163_v46 = vsel %vm24_vm0, %v495_v44, 0.0 }
  0xbd   :  { %161 = vadd.xlane.f32.xlu1 %v160_v43  ;;  %164 = vadd.xlane.f32.xlu0 %v163_v46  ;;  %v166_v47 = vsel %vm24_vm0, %v497_v45, 0.0 }
  0xc1   :  { %167 = vadd.xlane.f32.xlu1 %v166_v47 }
 0x12e   :  { %v123_v48 = vpop.xlane.xlu0 %122 }
 0x12f   :  { %301 = vrcp.f32 %v123_v48 }
 0x132   :  { %v126_v49 = vpop.xlane.xlu1 %125  ;;  %v129_v50 = vpop.xlane.xlu0 %128 }
 0x133   :  { %303 = vrcp.f32 %v126_v49 }
 0x134   :  { %305 = vrcp.f32 %v129_v50 }
 0x136   :  { %v132_v51 = vpop.xlane.xlu1 %131  ;;  %v135_v52 = vpop.xlane.xlu0 %134 }
 0x137   :  { %307 = vrcp.f32 %v132_v51 }
 0x138   :  { %309 = vrcp.f32 %v135_v52 }
 0x139   :  { %v302_v53 = vpop.eup %301 }
 0x13a   :  { %v185_v55 = vmul.f32 %v302_v53, %v123_v48  ;;  %v138_v56 = vpop.xlane.xlu1 %137  ;;  %v141_v58 = vpop.xlane.xlu0 %140 }
 0x13b   :  { %311 = vrcp.f32 %v138_v56 }
 0x13c   :  { %v201_v59 = vsub.f32 2.0, %v185_v55  ;;  %313 = vrcp.f32 %v141_v58 }
 0x13d   :  { %v304_v60 = vpop.eup %303 }
 0x13e   :  { %v306_v61 = vpop.eup %305  ;;  %v217_v62 = vmul.f32 %v302_v53, %v201_v59  ;;  %v186_v63 = vmul.f32 %v304_v60, %v126_v49  ;;  %v144_v1 = vpop.xlane.xlu1 %143 }
 0x13f   :  { %v147_v2 = vpop.xlane.xlu0 %146  ;;  %v187_v4 = vmul.f32 %v306_v61, %v129_v50  ;;  %315 = vrcp.f32 %v144_v1 }
 0x140   :  { %v233_v5 = vmul.f32 %v431_v54, %v217_v62  ;;  %v202_v6 = vsub.f32 2.0, %v186_v63  ;;  %317 = vrcp.f32 %v147_v2 }
 0x141   :  { %v308_v7 = vpop.eup %307  ;;  %v203_v8 = vsub.f32 2.0, %v187_v4 }
 0x142   :  { %v310_v9 = vpop.eup %309  ;;  %249 = vst.msk [vmem:[%s584_s1] sm:$0xff] %vm24_vm0, %v233_v5  ;;  %v218_v11 = vmul.f32 %v304_v60, %v202_v6  ;;  %v188_v12 = vmul.f32 %v308_v7, %v132_v51  ;;  %v150_v14 = vpop.xlane.xlu1 %149 }
 0x143   :  { %v153_v15 = vpop.xlane.xlu0 %152  ;;  %v219_v16 = vmul.f32 %v306_v61, %v203_v8  ;;  %v189_v17 = vmul.f32 %v310_v9, %v135_v52  ;;  %319 = vrcp.f32 %v150_v14 }
 0x144   :  { %v234_v18 = vmul.f32 %v441_v0, %v218_v11  ;;  %v204_v54 = vsub.f32 2.0, %v188_v12  ;;  %321 = vrcp.f32 %v153_v15 }
 0x145   :  { %v312_v19 = vpop.eup %311  ;;  %v235_v21 = vmul.f32 %v433_v57, %v219_v16  ;;  %v205_v22 = vsub.f32 2.0, %v189_v17 }
 0x146   :  { %v314_v26 = vpop.eup %313  ;;  %250 = vst.msk [vmem:[%s584_s1 + $0x8] sm:$0xff] %vm24_vm0, %v234_v18  ;;  %v220_v27 = vmul.f32 %v308_v7, %v204_v54  ;;  %v190_v30 = vmul.f32 %v312_v19, %v138_v56  ;;  %v156_v24 = vpop.xlane.xlu1 %155 }
 0x147   :  { %v159_v25 = vpop.xlane.xlu0 %158  ;;  %251 = vst.msk [vmem:[%s584_s1 + $0x10] sm:$0xff] %vm24_vm0, %v235_v21  ;;  %v221_v0 = vmul.f32 %v310_v9, %v205_v22  ;;  %v191_v31 = vmul.f32 %v314_v26, %v141_v58  ;;  %323 = vrcp.f32 %v156_v24 }
 0x148   :  { %v236_v57 = vmul.f32 %v443_v3, %v220_v27  ;;  %v206_v33 = vsub.f32 2.0, %v190_v30  ;;  %325 = vrcp.f32 %v159_v25 }
 0x149   :  { %v316_v34 = vpop.eup %315  ;;  %v237_v36 = vmul.f32 %v451_v10, %v221_v0  ;;  %v207_v28 = vsub.f32 2.0, %v191_v31 }
 0x14a   :  { %v318_v38 = vpop.eup %317  ;;  %252 = vst.msk [vmem:[%s584_s1 + $0x18] sm:$0xff] %vm24_vm0, %v236_v57  ;;  %v222_v39 = vmul.f32 %v312_v19, %v206_v33  ;;  %v192_v42 = vmul.f32 %v316_v34, %v144_v1  ;;  %v162_v43 = vpop.xlane.xlu1 %161 }
 0x14b   :  { %v165_v46 = vpop.xlane.xlu0 %164  ;;  %253 = vst.msk [vmem:[%s584_s1 + $0x20] sm:$0xff] %vm24_vm0, %v237_v36  ;;  %v223_v3 = vmul.f32 %v314_v26, %v207_v28  ;;  %v193_v47 = vmul.f32 %v318_v38, %v147_v2  ;;  %327 = vrcp.f32 %v162_v43 }
 0x14c   :  { %v238_v10 = vmul.f32 %v453_v13, %v222_v39  ;;  %v208_v48 = vsub.f32 2.0, %v192_v42  ;;  %329 = vrcp.f32 %v165_v46 }
 0x14d   :  { %v320_v49 = vpop.eup %319  ;;  %v239_v50 = vmul.f32 %v461_v20, %v223_v3  ;;  %v209_v51 = vsub.f32 2.0, %v193_v47 }
 0x14e   :  { %v322_v52 = vpop.eup %321  ;;  %254 = vst.msk [vmem:[%s584_s1 + $0x28] sm:$0xff] %vm24_vm0, %v238_v10  ;;  %v224_v53 = vmul.f32 %v316_v34, %v208_v48  ;;  %v194_v55 = vmul.f32 %v320_v49, %v150_v14  ;;  %v168_v56 = vpop.xlane.xlu1 %167 }
 0x14f   :  { %255 = vst.msk [vmem:[%s584_s1 + $0x30] sm:$0xff] %vm24_vm0, %v239_v50  ;;  %v225_v13 = vmul.f32 %v318_v38, %v209_v51  ;;  %v195_v58 = vmul.f32 %v322_v52, %v153_v15  ;;  %331 = vrcp.f32 %v168_v56 }
 0x150   :  { %v240_v20 = vmul.f32 %v463_v23, %v224_v53  ;;  %v210_v59 = vsub.f32 2.0, %v194_v55 }
 0x151   :  { %v324_v60 = vpop.eup %323  ;;  %v241_v61 = vmul.f32 %v471_v32, %v225_v13  ;;  %v211_v62 = vsub.f32 2.0, %v195_v58 }
 0x152   :  { %v326_v63 = vpop.eup %325  ;;  %256 = vst.msk [vmem:[%s584_s1 + $0x38] sm:$0xff] %vm24_vm0, %v240_v20  ;;  %v226_v1 = vmul.f32 %v320_v49, %v210_v59  ;;  %v196_v2 = vmul.f32 %v324_v60, %v156_v24 }
 0x153   :  { %257 = vst.msk [vmem:[%s584_s1 + $0x40] sm:$0xff] %vm24_vm0, %v241_v61  ;;  %v227_v4 = vmul.f32 %v322_v52, %v211_v62  ;;  %v197_v23 = vmul.f32 %v326_v63, %v159_v25 }
 0x154   :  { %v242_v5 = vmul.f32 %v473_v35, %v226_v1  ;;  %v212_v6 = vsub.f32 2.0, %v196_v2 }
 0x155   :  { %v328_v32 = vpop.eup %327  ;;  %v243_v7 = vmul.f32 %v479_v29, %v227_v4  ;;  %v213_v8 = vsub.f32 2.0, %v197_v23 }
 0x156   :  { %v330_v9 = vpop.eup %329  ;;  %258 = vst.msk [vmem:[%s584_s1 + $0x48] sm:$0xff] %vm24_vm0, %v242_v5  ;;  %v228_v11 = vmul.f32 %v324_v60, %v212_v6  ;;  %v198_v12 = vmul.f32 %v328_v32, %v162_v43 }
 0x157   :  { %259 = vst.msk [vmem:[%s584_s1 + $0x50] sm:$0xff] %vm24_vm0, %v243_v7  ;;  %v229_v14 = vmul.f32 %v326_v63, %v213_v8  ;;  %v199_v35 = vmul.f32 %v330_v9, %v165_v46 }
 0x158   :  { %v244_v15 = vmul.f32 %v481_v37, %v228_v11  ;;  %v214_v16 = vsub.f32 2.0, %v198_v12 }
 0x159   :  { %v332_v29 = vpop.eup %331  ;;  %v245_v17 = vmul.f32 %v487_v40, %v229_v14  ;;  %v215_v18 = vsub.f32 2.0, %v199_v35 }
 0x15a   :  { %260 = vst.msk [vmem:[%s584_s1 + $0x58] sm:$0xff] %vm24_vm0, %v244_v15  ;;  %v230_v54 = vmul.f32 %v328_v32, %v214_v16  ;;  %v200_v19 = vmul.f32 %v332_v29, %v168_v56 }
 0x15b   :  { %261 = vst.msk [vmem:[%s584_s1 + $0x60] sm:$0xff] %vm24_vm0, %v245_v17  ;;  %v231_v21 = vmul.f32 %v330_v9, %v215_v18 }
 0x15c   :  { %v246_v37 = vmul.f32 %v489_v41, %v230_v54  ;;  %v216_v22 = vsub.f32 2.0, %v200_v19 }
 0x15d   :  { %v247_v26 = vmul.f32 %v495_v44, %v231_v21 }
 0x15e   :  { %262 = vst.msk [vmem:[%s584_s1 + $0x68] sm:$0xff] %vm24_vm0, %v246_v37  ;;  %v232_v40 = vmul.f32 %v332_v29, %v216_v22 }
 0x15f   :  { %263 = vst.msk [vmem:[%s584_s1 + $0x70] sm:$0xff] %vm24_vm0, %v247_v26 }
 0x160   :  { %v248_v27 = vmul.f32 %v497_v45, %v232_v40 }
 0x162   :  { %264 = vst.msk [vmem:[%s584_s1 + $0x78] sm:$0xff] %vm24_vm0, %v248_v27 }

</bundles_post_ra>
